<compile_context>
chip_gen: v6e
topology: v6e:2x2x1
jax: 0.10.0
libtpu: 0.0.40
codegen_flags: <defaults>
</compile_context>

<pallas_src>
import functools

import jax
import jax.numpy as jnp
from jax.experimental import pallas as pl
from jax.experimental.pallas import tpu as pltpu


def _distill_kl_kernel(ys_ref, yt_ref, out_ref, *, inv_temp, n_rows,
                       tile_rows, needs_mask):
    i = pl.program_id(0)

    # Upcast to f32 for stable softmax math; scale by 1/T (multiply, not div).
    ys = ys_ref[...].astype(jnp.float32) * inv_temp
    yt = yt_ref[...].astype(jnp.float32) * inv_temp

    # Student: only the shifted logits and the row log-partition are needed.
    s_max = jnp.max(ys, axis=-1, keepdims=True)
    s_shift = ys - s_max
    s_logz = jnp.log(jnp.sum(jnp.exp(s_shift), axis=-1, keepdims=True))

    # Teacher: softmax numerator/denominator along the class (lane) axis.
    t_max = jnp.max(yt, axis=-1, keepdims=True)
    t_shift = yt - t_max
    t_exp = jnp.exp(t_shift)
    t_sum = jnp.sum(t_exp, axis=-1, keepdims=True)
    inv_t_sum = pl.reciprocal(t_sum, approx=False)      # one recip per row

    # log_p_t - log_p_s = (t_shift - s_shift) + (s_logz - log(t_sum));
    # the per-row constant is folded into a single broadcast add.
    row_const = s_logz - jnp.log(t_sum)
    # p_t > 0 always, so PyTorch's xlogy zero-handling never triggers.
    contrib = (t_exp * inv_t_sum) * ((t_shift - s_shift) + row_const)

    def _store(vals):
        # Lane-dense per-block partial sums (sublane reduction only).
        out_ref[0] = jnp.sum(vals, axis=0, keepdims=True)

    if needs_mask:
        last = pl.num_programs(0) - 1

        @pl.when(i == last)
        def _():
            # Zero out rows of the partial last tile (padding is unspecified;
            # jnp.where is a true select, so garbage/NaN rows are discarded).
            row_ids = jax.lax.broadcasted_iota(jnp.int32, (tile_rows, 1), 0)
            valid = row_ids < (n_rows - i * tile_rows)
            _store(jnp.where(valid, contrib, 0.0))

        @pl.when(i != last)
        def _():
            _store(contrib)
    else:
        _store(contrib)


def distill_kl(y_s, y_t, T, *, tile_rows=None):
    """Pallas implementation of DistillKL.forward. Returns a scalar f32."""
    assert y_s.shape == y_t.shape and y_s.ndim == 2
    N, C = y_s.shape
    itemsize = jnp.dtype(y_s.dtype).itemsize

    if tile_rows is None:
        # ~4 MiB per input pipeline buffer (dtype-aware), multiple of 8 rows.
        target_bytes = 4 * 1024 * 1024
        tile_rows = max(8, (target_bytes // max(1, C * itemsize)) // 8 * 8)
    if tile_rows >= N:
        tile_rows = N                     # one block covers the whole batch
        # v7x megacore: split a large single block in two so both TensorCores
        # get work; skip for small batches where per-step overhead dominates.
        if N >= 16 and N * C * itemsize >= 2 * 1024 * 1024:
            half = -(-pl.cdiv(N, 2) // 8) * 8
            if half < N:
                tile_rows = half
    assert tile_rows == N or tile_rows % 8 == 0

    grid = pl.cdiv(N, tile_rows)
    needs_mask = (N % tile_rows) != 0

    # VMEM budget: 2 inputs x 2 pipeline buffers x block + output buffers.
    in_block_bytes = tile_rows * C * itemsize
    pipeline_bytes = 2 * 2 * in_block_bytes + 2 * C * 4
    vmem_limit = max(32 * 1024 * 1024, int(pipeline_bytes * 3 // 2))
    # TODO(synk): for vocab-scale C (>=256k classes) on v7x (64 MiB VMEM), a
    # C-tiled two-pass / online-softmax variant is needed instead of simply
    # raising vmem_limit_bytes.

    kernel = functools.partial(
        _distill_kl_kernel,
        inv_temp=1.0 / float(T),
        n_rows=N,
        tile_rows=tile_rows,
        needs_mask=needs_mask,
    )

    cost = pl.CostEstimate(
        flops=10 * N * C,
        transcendentals=2 * N * C,
        bytes_accessed=2 * N * C * itemsize + grid * C * 4,
    )

    partials = pl.pallas_call(
        kernel,
        out_shape=jax.ShapeDtypeStruct((grid, 1, C), jnp.float32),
        grid=(grid,),
        in_specs=[
            pl.BlockSpec((tile_rows, C), lambda i: (i, 0)),
            pl.BlockSpec((tile_rows, C), lambda i: (i, 0)),
        ],
        out_specs=pl.BlockSpec((1, 1, C), lambda i: (i, 0, 0)),
        compiler_params=pltpu.CompilerParams(
            dimension_semantics=("parallel",),
            vmem_limit_bytes=vmem_limit,
        ),
        cost_estimate=cost,
    )(y_s, y_t)

    # Tiny final reduction + T^2 / N scaling outside the kernel.
    return jnp.sum(partials) * (float(T) * float(T) / float(N))


def _distill_kl_ref(y_s, y_t, T):
    """Plain-JAX reference for sanity checking."""
    log_p_s = jax.nn.log_softmax(y_s / T, axis=1)
    p_t = jax.nn.softmax(y_t / T, axis=1)
    log_p_t = jax.nn.log_softmax(y_t / T, axis=1)
    return jnp.sum(p_t * (log_p_t - log_p_s)) * T**2 / y_s.shape[0]


if __name__ == "__main__":
    key = jax.random.PRNGKey(0)
    k1, k2, k3, k4 = jax.random.split(key, 4)

    # Small, TPU-friendly shapes: batch=8 rows (sublanes), 128 classes (lanes).
    N, C, T = 8, 128, 4.0
    y_s = jax.random.normal(k1, (N, C), dtype=jnp.float32)
    y_t = jax.random.normal(k2, (N, C), dtype=jnp.float32)
    loss = jax.block_until_ready(distill_kl(y_s, y_t, T))
    ref = jax.block_until_ready(_distill_kl_ref(y_s, y_t, T))
    assert jnp.allclose(loss, ref, rtol=1e-5, atol=1e-5), (loss, ref)

    # Exercise the batch-dim grid + last-tile-only row mask (N % tile != 0).
    N2, C2, T2 = 36, 256, 2.0
    y_s2 = jax.random.normal(k3, (N2, C2), dtype=jnp.float32)
    y_t2 = jax.random.normal(k4, (N2, C2), dtype=jnp.float32)
    loss2 = jax.block_until_ready(distill_kl(y_s2, y_t2, T2, tile_rows=16))
    ref2 = jax.block_until_ready(_distill_kl_ref(y_s2, y_t2, T2))
    assert jnp.allclose(loss2, ref2, rtol=1e-5, atol=1e-5), (loss2, ref2)

    # bf16 inputs (dtype-aware tiling path; upcast happens inside the kernel).
    y_s3 = y_s2.astype(jnp.bfloat16)
    y_t3 = y_t2.astype(jnp.bfloat16)
    loss3 = jax.block_until_ready(distill_kl(y_s3, y_t3, T2))
    ref3 = jax.block_until_ready(
        _distill_kl_ref(y_s3.astype(jnp.float32), y_t3.astype(jnp.float32), T2))
    assert jnp.allclose(loss3, ref3, rtol=2e-2, atol=2e-2), (loss3, ref3)

    print("KERNEL_OK")
</pallas_src>

<mosaic_0001>
module attributes {stable_mosaic.version = 11 : i64} {
  func.func @_distill_kl_kernel(%arg0: i32, %arg1: memref<8x128xf32, #tpu.memory_space<vmem>>, %arg2: memref<8x128xf32, #tpu.memory_space<vmem>>, %arg3: memref<1x1x128xf32, #tpu.memory_space<vmem>>) attributes {dimension_semantics = [#tpu.dimension_semantics<parallel>], iteration_bounds = array<i64: 1>, scalar_prefetch = 0 : i64, scratch_operands = 0 : i64, tpu.core_type = #tpu.core_type<tc>, window_params = [{transform_indices = @transform_0, window_bounds = array<i64: 8, 128>}, {transform_indices = @transform_1, window_bounds = array<i64: 8, 128>}, {transform_indices = @transform_2, window_bounds = array<i64: 1, 1, 128>}]} {
    %c0 = arith.constant 0 : index
    %c0_0 = arith.constant 0 : index
    %0 = vector.load %arg1[%c0, %c0_0] : memref<8x128xf32, #tpu.memory_space<vmem>>, vector<8x128xf32>
    %cst = arith.constant 2.500000e-01 : f32
    %1 = vector.broadcast %cst : f32 to vector<8x128xf32>
    %2 = arith.mulf %0, %1 : vector<8x128xf32>
    %c0_1 = arith.constant 0 : index
    %c0_2 = arith.constant 0 : index
    %3 = vector.load %arg2[%c0_1, %c0_2] : memref<8x128xf32, #tpu.memory_space<vmem>>, vector<8x128xf32>
    %cst_3 = arith.constant 2.500000e-01 : f32
    %4 = vector.broadcast %cst_3 : f32 to vector<8x128xf32>
    %5 = arith.mulf %3, %4 : vector<8x128xf32>
    %cst_4 = arith.constant dense<0xFF800000> : vector<8xf32>
    %6 = vector.multi_reduction <maximumf>, %2, %cst_4 [1] : vector<8x128xf32> to vector<8xf32>
    %7 = vector.shape_cast %6 : vector<8xf32> to vector<8x1xf32>
    %8 = vector.broadcast %7 : vector<8x1xf32> to vector<8x128xf32>
    %9 = arith.subf %2, %8 : vector<8x128xf32>
    %10 = math.exp %9 : vector<8x128xf32>
    %cst_5 = arith.constant dense<0.000000e+00> : vector<8xf32>
    %11 = vector.multi_reduction <add>, %10, %cst_5 [1] : vector<8x128xf32> to vector<8xf32>
    %12 = vector.shape_cast %11 : vector<8xf32> to vector<8x1xf32>
    %13 = math.log %12 : vector<8x1xf32>
    %cst_6 = arith.constant dense<0xFF800000> : vector<8xf32>
    %14 = vector.multi_reduction <maximumf>, %5, %cst_6 [1] : vector<8x128xf32> to vector<8xf32>
    %15 = vector.shape_cast %14 : vector<8xf32> to vector<8x1xf32>
    %16 = vector.broadcast %15 : vector<8x1xf32> to vector<8x128xf32>
    %17 = arith.subf %5, %16 : vector<8x128xf32>
    %18 = math.exp %17 : vector<8x128xf32>
    %cst_7 = arith.constant dense<0.000000e+00> : vector<8xf32>
    %19 = vector.multi_reduction <add>, %18, %cst_7 [1] : vector<8x128xf32> to vector<8xf32>
    %20 = vector.shape_cast %19 : vector<8xf32> to vector<8x1xf32>
    %21 = tpu.reciprocal %20 : vector<8x1xf32> -> vector<8x1xf32>
    %22 = math.log %20 : vector<8x1xf32>
    %23 = arith.subf %13, %22 : vector<8x1xf32>
    %24 = vector.broadcast %21 : vector<8x1xf32> to vector<8x128xf32>
    %25 = arith.mulf %18, %24 : vector<8x128xf32>
    %26 = arith.subf %17, %9 : vector<8x128xf32>
    %27 = vector.broadcast %23 : vector<8x1xf32> to vector<8x128xf32>
    %28 = arith.addf %26, %27 : vector<8x128xf32>
    %29 = arith.mulf %25, %28 : vector<8x128xf32>
    %cst_8 = arith.constant dense<0.000000e+00> : vector<128xf32>
    %30 = vector.multi_reduction <add>, %29, %cst_8 [0] : vector<8x128xf32> to vector<128xf32>
    %31 = vector.shape_cast %30 : vector<128xf32> to vector<1x128xf32>
    %c0_9 = arith.constant 0 : index
    %c0_10 = arith.constant 0 : index
    %c0_11 = arith.constant 0 : index
    %32 = vector.load %arg3[%c0_9, %c0_10, %c0_11] : memref<1x1x128xf32, #tpu.memory_space<vmem>>, vector<1x1x128xf32>
    %33 = vector.shape_cast %32 : vector<1x1x128xf32> to vector<1x128xf32>
    %34 = vector.shape_cast %31 : vector<1x128xf32> to vector<1x1x128xf32>
    tpu.vector_store %arg3[%c0_9, %c0_10, %c0_11], %34 {strides = array<i32>} : memref<1x1x128xf32, #tpu.memory_space<vmem>>, vector<1x1x128xf32>,
    return
  }
  func.func @transform_0(%arg0: i32) -> (i32, i32) {
    %c0_i32 = arith.constant 0 : i32
    %c0_i32_0 = arith.constant 0 : i32
    return %arg0, %c0_i32 : i32, i32
  }
  func.func @transform_1(%arg0: i32) -> (i32, i32) {
    %c0_i32 = arith.constant 0 : i32
    %c0_i32_0 = arith.constant 0 : i32
    return %arg0, %c0_i32 : i32, i32
  }
  func.func @transform_2(%arg0: i32) -> (i32, i32, i32) {
    %c0_i32 = arith.constant 0 : i32
    %c0_i32_0 = arith.constant 0 : i32
    %c0_i32_1 = arith.constant 0 : i32
    return %arg0, %c0_i32, %c0_i32_0 : i32, i32, i32
  }
}

</mosaic_0001>

<bundles_post_ra>
// kernel: tpu_custom_call.1
= control target key start
LH: loop header
LB: loop body
LE: loop exit
PB: predicated region body
PF: predicated region fallthrough
CT: control target
= control target key end

     0   :  { %7 = vsyncpa [#allocation3], 0  ;;  %s193_s0 = inlined_call_operand.hbm [shape: f32[8,128], index: 0, kind: input, shape index: {}]   ;;  %s194_s1 = inlined_call_operand.hbm [shape: f32[8,128], index: 1, kind: input, shape index: {}]   ;;  %s195_s2 = inlined_call_operand.hbm [shape: f32[1,1,128], index: 2, kind: output, shape index: {}]  }
   0x1   :  { %8 = vsyncpa [#allocation6], 0 }
   0x2   :  { %9 = vsyncpa [#allocation4], 0  ;;  %s166_s9 = smov [#allocation2]   ;;  %s167_s11 = smov [#allocation5]  }
   0x3   :  { %s16_s10 = sshll.u32 %s166_s9, 4  ;;  %s26_s12 = sshll.u32 %s167_s11, 4  ;;  %s17_s10 = int_to_ptr.vmem [resolvable:$true] %s16_s10  ;;  %s27_s12 = int_to_ptr.vmem [resolvable:$true] %s26_s12 }
   0x4   :  { %s108_s13 = scalar_lea.vmem %s17_s10, 128  ;;  %p113_p1 = scmp.lt.s32.totalorder %s17_s10, %s17_s10 }
   0x5   :  { %p109_p0 = scmp.ne.s32.totalorder %s17_s10, %s108_s13  ;;  %p114_p2 = scmp.lt.s32.totalorder %s108_s13, %s108_s13 }
   0x7   :  { %p115_p3 = por %p114_p2, %p113_p1 }
   0x9   :  { %p116_p4 = pnand %p115_p3, %p109_p0 }
   0xb   :  { %119 = shalt.err (!%p116_p4)
}
   0xc   :  { %19 = dma.hbm_to_vmem [thread:$0]  %s193_s0, 128, %s17_s10, [#allocation3]  }
   0xd   :  { %s128_s16 = scalar_lea.vmem %s27_s12, 128  ;;  %p133_p6 = scmp.lt.s32.totalorder %s27_s12, %s27_s12 }
   0xe   :  { %p129_p5 = scmp.ne.s32.totalorder %s27_s12, %s128_s16  ;;  %p134_p7 = scmp.lt.s32.totalorder %s128_s16, %s128_s16 }
  0x10   :  { %p135_p8 = por %p134_p7, %p133_p6 }
  0x12   :  { %p136_p9 = pnand %p135_p8, %p129_p5 }
  0x14   :  { %139 = shalt.err (!%p136_p9)
}
  0x15   :  { %29 = dma.hbm_to_vmem [thread:$0]  %s194_s1, 128, %s27_s12, [#allocation6]  }
  0x16   :  { %160 = dma.done.wait [#allocation3], 128  }
  0x17   :  { %161 = vsyncadd [#allocation3], 4294967168 }
  0x18   :  { %162 = dma.done.wait [#allocation6], 128  }
  0x19   :  { %163 = vsyncadd [#allocation6], 4294967168  ;;  %v36_v0 = vld [vmem:[#allocation2] sm:$0xff]  ;;  %v38_v1 = vld [vmem:[#allocation5] sm:$0xff]  ;;  %s168_s0 = smov [#allocation7]  }
  0x1a   :  { %v37_v2 = vmul.f32 0.25, %v36_v0  ;;  %v39_v3 = vmul.f32 0.25, %v38_v1  ;;  %s77_s1 = sshll.u32 %s168_s0, 4  ;;  %s78_s1 = int_to_ptr.vmem [resolvable:$true] %s77_s1 }
  0x1b   :  { %s140_s19 = scalar_lea.vmem %s78_s1, 16  ;;  %s144_s20 = scalar_lea.vmem %s78_s1, 32 }
  0x1c   :  { %40 = vmax.xlane.f32.xlu0 %v37_v2  ;;  %p141_p10 = scmp.ne.s32.totalorder %s78_s1, %s140_s19  ;;  %p145_p11 = scmp.lt.s32.totalorder %s78_s1, %s78_s1 }
  0x1d   :  { %p146_p12 = scmp.lt.s32.totalorder %s144_s20, %s140_s19 }
  0x1f   :  { %p147_p13 = por %p146_p12, %p145_p11 }
  0x20   :  { %49 = vmax.xlane.f32.xlu0 %v39_v3 }
  0x21   :  { %p148_p0 = pnand %p147_p13, %p141_p10 }
  0xa5   :  { %v41_v4 = vpop.xlane.xlu0 %40 }
  0xa6   :  { %v42_v5 = vsub.f32 %v37_v2, %v41_v4 }
  0xa8   :  { %v43_v6 = vmul.f32 1.442695, %v42_v5 }
  0xa9   :  { %v50_v7 = vpop.xlane.xlu0 %49 }
  0xaa   :  { %v51_v8 = vsub.f32 %v39_v3, %v50_v7  ;;  %90 = vpow2.f32 %v43_v6 }
  0xac   :  { %v52_v9 = vmul.f32 1.442695, %v51_v8  ;;  %v61_v10 = vsub.f32 %v51_v8, %v42_v5 }
  0xae   :  { %92 = vpow2.f32 %v52_v9 }
  0xb7   :  { %v91_v11 = vpop.eup %90 }
  0xb8   :  { %45 = vadd.xlane.f32.xlu1 %v91_v11 }
  0xbb   :  { %v93_v12 = vpop.eup %92 }
  0xbc   :  { %54 = vadd.xlane.f32.xlu1 %v93_v12 }
 0x141   :  { %v46_v13 = vpop.xlane.xlu1 %45 }
 0x142   :  { %94 = vlog2.f32 %v46_v13 }
 0x145   :  { %v55_v14 = vpop.xlane.xlu1 %54 }
 0x146   :  { %96 = vlog2.f32 %v55_v14 }
 0x147   :  { %98 = vrcp.f32 %v55_v14 }
 0x14f   :  { %v95_v15 = vpop.eup %94 }
 0x150   :  { %v48_v17 = vmul.f32 0.6931472, %v95_v15 }
 0x153   :  { %v97_v16 = vpop.eup %96 }
 0x154   :  { %v58_v18 = vmul.f32 0.6931472, %v97_v16  ;;  %v99_v19 = vpop.eup %98 }
 0x155   :  { %v60_v22 = vmul.f32 %v99_v19, %v93_v12 }
 0x156   :  { %v59_v20 = vsub.f32 %v48_v17, %v58_v18 }
 0x158   :  { %v62_v21 = vadd.f32 %v61_v10, %v59_v20 }
 0x15a   :  { %v63_v23 = vmul.f32 %v62_v21, %v60_v22 }
 0x15c   :  { %v64_v24 = vrot.slane %v63_v23, 4 }
 0x15e   :  { %v65_v25 = vadd.f32 %v64_v24, %v63_v23 }
 0x160   :  { %v66_v26 = vrot.slane %v65_v25, 2 }
 0x162   :  { %v67_v27 = vadd.f32 %v66_v26, %v65_v25 }
 0x164   :  { %v68_v28 = vrot.slane %v67_v27, 1 }
 0x166   :  { %v69_v29 = vadd.f32 %v68_v28, %v67_v27 }
 0x168   :  { %70 = vst [vmem:[#allocation7] sm:$0x1] %v69_v29 }
 0x169   :  { %151 = shalt.err (!%p148_p0)
}
 0x16a   :  { %80 = dma.vmem_to_hbm [thread:$0]  %s78_s1, 16, %s195_s2, [#allocation4]  }
 0x16b   :  { %164 = dma.done.wait [#allocation4], 16  }
 0x16c   :  { %165 = vsyncadd [#allocation4], 4294967280 }
 0x16d   :  { %84 = vsyncpa [#allocation3], 1 }
 0x16e   :  { %85 = vsyncpa [#allocation6], 1 }
 0x16f   :  { %86 = vsyncpa [#allocation4], 1 }

</bundles_post_ra>
